<compile_context>
chip_gen: v7x
topology: tpu7x:2x2x1
jax: 0.10.0
libtpu: 0.0.40
codegen_flags: <defaults>
</compile_context>

<pallas_src>
import functools

import jax
import jax.numpy as jnp
from jax import lax
from jax.experimental import pallas as pl
from jax.experimental.pallas import tpu as pltpu

BN_EPS = 1e-5
ACT_DTYPE = jnp.bfloat16
_MM_VMEM = 32 * 1024 * 1024      # explicit scoped-VMEM limit (safe on v5e/v6e/v7x)
_BN_FUSE_MAX_M = 2048            # above this row count BN uses the M-tiled 2-pass path


# --------------------------- tiling helpers ----------------------------------

def _round_up(x, m):
    return -(-x // m) * m


def _pick_tile(dim, max_tile):
    """Full-dim block if it fits, else the largest multiple-of-8 divisor, else pad."""
    if dim <= max_tile:
        return dim, dim
    for t in range(max_tile, 7, -8):
        if dim % t == 0:
            return t, dim
    return max_tile, _round_up(dim, max_tile)


def _pick_tile_k(K, max_tile=2304):
    """K tiles: full-K (<=2304) or multiples of 256 to keep the 256-deep MXU fed."""
    if K <= max_tile:
        Kp = _round_up(K, 8)          # only conv1 (K=49) actually pads
        return Kp, Kp
    for t in range(max_tile - max_tile % 256, 255, -256):
        if K % t == 0:
            return t, K
    Kp = _round_up(K, 256)
    for t in range(max_tile - max_tile % 256, 255, -256):
        if Kp % t == 0:
            return t, Kp
    return 256, _round_up(K, 256)


def _pick_tile_n(N, max_tile=512):
    if N <= max_tile:
        return N, N
    for t in range(max_tile, 127, -128):
        if N % t == 0:
            return t, N
    return max_tile, _round_up(N, max_tile)


def _cblk(C):
    return 128 if C % 128 == 0 else C


# --------------------------- matmul kernels ----------------------------------

def _matmul_kernel_acc(a_ref, b_ref, o_ref, acc_ref):
    @pl.when(pl.program_id(2) == 0)
    def _():
        acc_ref[...] = jnp.zeros_like(acc_ref)

    acc_ref[...] += jnp.dot(a_ref[...], b_ref[...],
                            preferred_element_type=jnp.float32)

    @pl.when(pl.program_id(2) == pl.num_programs(2) - 1)
    def _():
        o_ref[...] = acc_ref[...].astype(o_ref.dtype)


def _matmul_kernel_single(a_ref, b_ref, o_ref):
    o_ref[...] = jnp.dot(a_ref[...], b_ref[...],
                         preferred_element_type=jnp.float32).astype(o_ref.dtype)


def pallas_matmul(a, b, out_dtype=jnp.float32):
    """Tiled MXU matmul a(M,K) @ b(K,N).  bf16 operands, f32 accumulation."""
    M, K = a.shape
    K2, N = b.shape
    assert K == K2
    tm, Mp = _pick_tile(M, 512)
    tk, Kp = _pick_tile_k(K)
    tn, Np = _pick_tile_n(N)
    if (Mp, Kp) != (M, K):
        a = jnp.pad(a, ((0, Mp - M), (0, Kp - K)))
    if (Kp, Np) != (K, N):
        b = jnp.pad(b, ((0, Kp - K), (0, Np - N)))

    nk = Kp // tk
    common = dict(
        out_shape=jax.ShapeDtypeStruct((Mp, Np), out_dtype),
        grid=(Mp // tm, Np // tn, nk),
        in_specs=[pl.BlockSpec((tm, tk), lambda i, j, k: (i, k)),
                  pl.BlockSpec((tk, tn), lambda i, j, k: (k, j))],
        out_specs=pl.BlockSpec((tm, tn), lambda i, j, k: (i, j)),
        compiler_params=pltpu.CompilerParams(
            dimension_semantics=("parallel", "parallel", "arbitrary"),
            vmem_limit_bytes=_MM_VMEM),
    )
    if nk == 1:
        out = pl.pallas_call(_matmul_kernel_single, **common)(a, b)
    else:
        out = pl.pallas_call(_matmul_kernel_acc,
                             scratch_shapes=[pltpu.VMEM((tm, tn), jnp.float32)],
                             **common)(a, b)
    if (Mp, Np) != (M, N):
        out = out[:M, :N]
    return out


# ----------------------- BatchNorm (+add+ReLU) kernels -----------------------

def _bn_act_fused_kernel(x_ref, g_ref, b_ref, o_ref, *, relu, inv_m):
    x = x_ref[...].astype(jnp.float32)
    mean = jnp.sum(x, axis=0, keepdims=True) * inv_m
    var = jnp.sum(x * x, axis=0, keepdims=True) * inv_m - mean * mean
    y = (x - mean) * lax.rsqrt(var + BN_EPS) * g_ref[...] + b_ref[...]
    if relu:
        y = jnp.maximum(y, 0.0)
    o_ref[...] = y.astype(o_ref.dtype)


def _bn_add_relu_fused_kernel(*refs, ds_bn, inv_m):
    if ds_bn:
        x_ref, r_ref, g_ref, b_ref, gr_ref, br_ref, o_ref = refs
    else:
        x_ref, r_ref, g_ref, b_ref, o_ref = refs
    x = x_ref[...].astype(jnp.float32)
    mean = jnp.sum(x, axis=0, keepdims=True) * inv_m
    var = jnp.sum(x * x, axis=0, keepdims=True) * inv_m - mean * mean
    y = (x - mean) * lax.rsqrt(var + BN_EPS) * g_ref[...] + b_ref[...]
    r = r_ref[...].astype(jnp.float32)
    if ds_bn:
        rm = jnp.sum(r, axis=0, keepdims=True) * inv_m
        rv = jnp.sum(r * r, axis=0, keepdims=True) * inv_m - rm * rm
        r = (r - rm) * lax.rsqrt(rv + BN_EPS) * gr_ref[...] + br_ref[...]
    o_ref[...] = jnp.maximum(y + r, 0.0).astype(o_ref.dtype)


def _channel_stats_kernel(x_ref, sum_ref, sq_ref):
    @pl.when(pl.program_id(1) == 0)
    def _():
        sum_ref[...] = jnp.zeros_like(sum_ref)
        sq_ref[...] = jnp.zeros_like(sq_ref)
    x = x_ref[...].astype(jnp.float32)
    sum_ref[...] += jnp.sum(x, axis=0, keepdims=True)
    sq_ref[...] += jnp.sum(x * x, axis=0, keepdims=True)


def _affine_kernel(x_ref, s_ref, t_ref, o_ref, *, relu):
    y = x_ref[...].astype(jnp.float32) * s_ref[...] + t_ref[...]
    if relu:
        y = jnp.maximum(y, 0.0)
    o_ref[...] = y.astype(o_ref.dtype)


def _affine_add_relu_kernel(x_ref, r_ref, sx_ref, tx_ref, sr_ref, tr_ref, o_ref):
    y = (x_ref[...].astype(jnp.float32) * sx_ref[...] + tx_ref[...]
         + r_ref[...].astype(jnp.float32) * sr_ref[...] + tr_ref[...])
    o_ref[...] = jnp.maximum(y, 0.0).astype(o_ref.dtype)


def pallas_channel_stats(x2d):
    """Per-channel [sum, sum-of-squares] over rows; M is the 'arbitrary' grid axis."""
    M, C = x2d.shape
    cb = _cblk(C)
    tm, Mp = _pick_tile(M, 1024)
    if Mp != M:
        x2d = jnp.pad(x2d, ((0, Mp - M), (0, 0)))     # zero rows don't change sums
    row = pl.BlockSpec((1, cb), lambda c, m: (0, c))
    return pl.pallas_call(
        _channel_stats_kernel,
        out_shape=(jax.ShapeDtypeStruct((1, C), jnp.float32),
                   jax.ShapeDtypeStruct((1, C), jnp.float32)),
        grid=(C // cb, Mp // tm),
        in_specs=[pl.BlockSpec((tm, cb), lambda c, m: (m, c))],
        out_specs=(row, row),
        compiler_params=pltpu.CompilerParams(
            dimension_semantics=("parallel", "arbitrary")),
    )(x2d)


def _bn_scale_shift(s, q, m, gamma, beta):
    mean = s / m
    var = q / m - mean * mean
    scale = gamma * lax.rsqrt(var + BN_EPS)
    shift = beta - mean * scale
    return scale, shift


def pallas_affine_act(x2d, scale, shift, relu):
    M, C = x2d.shape
    cb = _cblk(C)
    tm, Mp = _pick_tile(M, 1024)
    if Mp != M:
        x2d = jnp.pad(x2d, ((0, Mp - M), (0, 0)))
    vec = pl.BlockSpec((tm, cb), lambda i, j: (i, j))
    row = pl.BlockSpec((1, cb), lambda i, j: (0, j))
    out = pl.pallas_call(
        functools.partial(_affine_kernel, relu=relu),
        out_shape=jax.ShapeDtypeStruct((Mp, C), ACT_DTYPE),
        grid=(Mp // tm, C // cb),
        in_specs=[vec, row, row],
        out_specs=vec,
        compiler_params=pltpu.CompilerParams(
            dimension_semantics=("parallel", "parallel")),
    )(x2d, scale, shift)
    return out[:M] if Mp != M else out


def pallas_affine_add_relu(x2d, r2d, sx, tx, sr, tr):
    M, C = x2d.shape
    cb = _cblk(C)
    tm, Mp = _pick_tile(M, 1024)
    if Mp != M:
        x2d = jnp.pad(x2d, ((0, Mp - M), (0, 0)))
        r2d = jnp.pad(r2d, ((0, Mp - M), (0, 0)))
    vec = pl.BlockSpec((tm, cb), lambda i, j: (i, j))
    row = pl.BlockSpec((1, cb), lambda i, j: (0, j))
    out = pl.pallas_call(
        _affine_add_relu_kernel,
        out_shape=jax.ShapeDtypeStruct((Mp, C), ACT_DTYPE),
        grid=(Mp // tm, C // cb),
        in_specs=[vec, vec, row, row, row, row],
        out_specs=vec,
        compiler_params=pltpu.CompilerParams(
            dimension_semantics=("parallel", "parallel")),
    )(x2d, r2d, sx, tx, sr, tr)
    return out[:M] if Mp != M else out


def pallas_bn_act(x2d, gamma, beta, relu):
    M, C = x2d.shape
    cb = _cblk(C)
    if M <= _BN_FUSE_MAX_M:
        vec = pl.BlockSpec((M, cb), lambda j: (0, j))
        row = pl.BlockSpec((1, cb), lambda j: (0, j))
        return pl.pallas_call(
            functools.partial(_bn_act_fused_kernel, relu=relu, inv_m=1.0 / M),
            out_shape=jax.ShapeDtypeStruct((M, C), ACT_DTYPE),
            grid=(C // cb,),
            in_specs=[vec, row, row],
            out_specs=vec,
            compiler_params=pltpu.CompilerParams(dimension_semantics=("parallel",)),
        )(x2d, gamma, beta)
    s, q = pallas_channel_stats(x2d)
    scale, shift = _bn_scale_shift(s, q, M, gamma, beta)
    return pallas_affine_act(x2d, scale, shift, relu)


def pallas_bn_add_relu(x2d, r2d, gamma, beta, gamma_r=None, beta_r=None):
    """Fused relu( BN(x) + [BN_ds(r) or r] ) — one pass per BasicBlock tail."""
    M, C = x2d.shape
    cb = _cblk(C)
    ds_bn = gamma_r is not None
    if M <= _BN_FUSE_MAX_M:
        vec = pl.BlockSpec((M, cb), lambda j: (0, j))
        row = pl.BlockSpec((1, cb), lambda j: (0, j))
        in_specs = [vec, vec, row, row] + ([row, row] if ds_bn else [])
        args = [x2d, r2d, gamma, beta] + ([gamma_r, beta_r] if ds_bn else [])
        return pl.pallas_call(
            functools.partial(_bn_add_relu_fused_kernel, ds_bn=ds_bn, inv_m=1.0 / M),
            out_shape=jax.ShapeDtypeStruct((M, C), ACT_DTYPE),
            grid=(C // cb,),
            in_specs=in_specs,
            out_specs=vec,
            compiler_params=pltpu.CompilerParams(dimension_semantics=("parallel",)),
        )(*args)
    s, q = pallas_channel_stats(x2d)
    sx, tx = _bn_scale_shift(s, q, M, gamma, beta)
    if ds_bn:
        rs, rq = pallas_channel_stats(r2d)
        sr, tr = _bn_scale_shift(rs, rq, M, gamma_r, beta_r)
    else:
        sr = jnp.ones((1, C), jnp.float32)
        tr = jnp.zeros((1, C), jnp.float32)
    return pallas_affine_add_relu(x2d, r2d, sx, tx, sr, tr)


# -------------------- fused avgpool + concat + FC head -----------------------

def _head_kernel(x_ref, w1a_ref, w1b_ref, b1_ref, w2_ref, b2_ref, o_ref, *, inv_hw):
    # x_ref: (2, N, HW, C) bf16 — branch-0 / branch-1 trunk feature maps.
    f1 = jnp.sum(x_ref[0].astype(jnp.float32), axis=1) * inv_hw     # (N, C) avgpool
    f2 = jnp.sum(x_ref[1].astype(jnp.float32), axis=1) * inv_hw
    h = (jnp.dot(f1, w1a_ref[...], preferred_element_type=jnp.float32)
         + jnp.dot(f2, w1b_ref[...], preferred_element_type=jnp.float32)
         + b1_ref[...])                                             # concat folded in
    h = jnp.maximum(h, 0.0)
    # Final 256->1 projection as VPU multiply + lane reduction (no 1-lane MXU push).
    y = jnp.sum(h * w2_ref[...], axis=-1, keepdims=True) + b2_ref[...]
    o_ref[...] = 1.0 / (1.0 + jnp.exp(-y))


def pallas_head(x4d, w1a, w1b, b1, w2_row, b2):
    _, N, HW, C = x4d.shape
    H1 = w1a.shape[1]
    return pl.pallas_call(
        functools.partial(_head_kernel, inv_hw=1.0 / HW),
        out_shape=jax.ShapeDtypeStruct((N, 1), jnp.float32),
        grid=(1,),
        in_specs=[pl.BlockSpec((2, N, HW, C), lambda i: (0, 0, 0, 0)),
                  pl.BlockSpec((C, H1), lambda i: (0, 0)),
                  pl.BlockSpec((C, H1), lambda i: (0, 0)),
                  pl.BlockSpec((1, H1), lambda i: (0, 0)),
                  pl.BlockSpec((1, H1), lambda i: (0, 0)),
                  pl.BlockSpec((1, 1), lambda i: (0, 0))],
        out_specs=pl.BlockSpec((N, 1), lambda i: (0, 0)),
        compiler_params=pltpu.CompilerParams(vmem_limit_bytes=_MM_VMEM),
    )(x4d, w1a, w1b, b1, w2_row, b2)


# ------------------------------- conv glue ------------------------------------

def im2col(x, kh, kw, stride, pad):
    N, H, W, C = x.shape
    Ho = (H + 2 * pad - kh) // stride + 1
    Wo = (W + 2 * pad - kw) // stride + 1
    xp = jnp.pad(x, ((0, 0), (pad, pad), (pad, pad), (0, 0))) if pad else x
    cols = []
    for i in range(kh):
        for j in range(kw):
            cols.append(xp[:, i:i + stride * (Ho - 1) + 1:stride,
                           j:j + stride * (Wo - 1) + 1:stride, :])
    patches = jnp.stack(cols, axis=3)                 # (N, Ho, Wo, kh*kw, C)
    return patches.reshape(N * Ho * Wo, kh * kw * C), (N, Ho, Wo)


def conv2d(x, w_flat, kh, kw, stride, pad):
    # w_flat: (kh*kw*Cin, Cout) bf16, rows ordered (ki, kj, cin). bf16 MXU, f32 acc.
    patches, (N, Ho, Wo) = im2col(x, kh, kw, stride, pad)
    y = pallas_matmul(patches, w_flat, out_dtype=ACT_DTYPE)
    return y.reshape(N, Ho, Wo, w_flat.shape[1])


def bn_act(x, gamma, beta, relu=True):
    N, H, W, C = x.shape
    y = pallas_bn_act(x.reshape(N * H * W, C), gamma, beta, relu)
    return y.reshape(N, H, W, C)


def maxpool_3x3_s2_p1(x):
    # Pairwise maximum over shifted views (single XLA fusion, no (9,M,C) HBM stack).
    N, H, W, C = x.shape
    Ho = (H + 2 - 3) // 2 + 1
    Wo = (W + 2 - 3) // 2 + 1
    xp = jnp.pad(x, ((0, 0), (1, 1), (1, 1), (0, 0)), constant_values=-jnp.inf)
    out = None
    for i in range(3):
        for j in range(3):
            v = xp[:, i:i + 2 * (Ho - 1) + 1:2, j:j + 2 * (Wo - 1) + 1:2, :]
            out = v if out is None else jnp.maximum(out, v)
    return out


def basic_block(x, p, stride):
    out = conv2d(x, p["conv1_w"], 3, 3, stride, 1)
    out = bn_act(out, p["bn1_g"], p["bn1_b"], relu=True)
    out = conv2d(out, p["conv2_w"], 3, 3, 1, 1)
    N, H, W, C = out.shape
    out2d = out.reshape(N * H * W, C)
    if "ds_w" in p:
        ident = conv2d(x, p["ds_w"], 1, 1, stride, 0).reshape(N * H * W, C)
        y = pallas_bn_add_relu(out2d, ident, p["bn2_g"], p["bn2_b"],
                               p["ds_g"], p["ds_b"])
    else:
        ident = x.reshape(N * H * W, C)
        y = pallas_bn_add_relu(out2d, ident, p["bn2_g"], p["bn2_b"])
    return y.reshape(N, H, W, C)


def resnet18_features(x_nchw, params):
    x = jnp.transpose(x_nchw, (0, 2, 3, 1)).astype(ACT_DTYPE)     # NCHW -> NHWC bf16
    x = conv2d(x, params["conv1_w"], 7, 7, 2, 3)
    x = bn_act(x, params["bn1_g"], params["bn1_b"], relu=True)
    x = maxpool_3x3_s2_p1(x)
    for layer_name, stride in (("layer1", 1), ("layer2", 2),
                               ("layer3", 2), ("layer4", 2)):
        blocks = params[layer_name]
        x = basic_block(x, blocks[0], stride)
        x = basic_block(x, blocks[1], 1)
    return x                                                      # (2N, H, W, 512) bf16


def siamese_forward(params, input1, input2):
    n = input1.shape[0]
    x = jnp.concatenate([input1, input2], axis=0)     # one shared-weight trunk pass
    feat_map = resnet18_features(x, params)           # (2n, H, W, 512)
    _, H, W, C = feat_map.shape
    x4d = feat_map.reshape(2, n, H * W, C)            # branch-major, no copy
    return pallas_head(x4d, params["fc1_wa"], params["fc1_wb"], params["fc1_b"],
                       params["fc2_w_row"], params["fc2_b"])      # (n, 1)


# ------------------------- parameter construction -----------------------------

def init_params(key):
    keys = iter(jax.random.split(key, 64))

    def conv_w(kh, kw, cin, cout):                    # kaiming-normal, fan_out; bf16
        std = (2.0 / (kh * kw * cout)) ** 0.5
        w = std * jax.random.normal(next(keys), (kh * kw * cin, cout), jnp.float32)
        return w.astype(jnp.bfloat16)

    def bn_pair(c):
        return jnp.ones((1, c), jnp.float32), jnp.zeros((1, c), jnp.float32)

    def block(cin, cout, downsample):
        g1, b1 = bn_pair(cout)
        g2, b2 = bn_pair(cout)
        p = {"conv1_w": conv_w(3, 3, cin, cout), "bn1_g": g1, "bn1_b": b1,
             "conv2_w": conv_w(3, 3, cout, cout), "bn2_g": g2, "bn2_b": b2}
        if downsample:
            gd, bd = bn_pair(cout)
            p["ds_w"], p["ds_g"], p["ds_b"] = conv_w(1, 1, cin, cout), gd, bd
        return p

    def xavier(fan_in, fan_out):
        lim = (6.0 / (fan_in + fan_out)) ** 0.5
        return jax.random.uniform(next(keys), (fan_in, fan_out),
                                  jnp.float32, -lim, lim)

    params = {"conv1_w": conv_w(7, 7, 1, 64)}
    params["bn1_g"], params["bn1_b"] = bn_pair(64)
    params["layer1"] = [block(64, 64, False), block(64, 64, False)]
    params["layer2"] = [block(64, 128, True), block(128, 128, False)]
    params["layer3"] = [block(128, 256, True), block(256, 256, False)]
    params["layer4"] = [block(256, 512, True), block(512, 512, False)]
    fc1 = xavier(1024, 256)
    params["fc1_wa"], params["fc1_wb"] = fc1[:512], fc1[512:]     # split for fused head
    params["fc1_b"] = jnp.full((1, 256), 0.01, jnp.float32)
    params["fc2_w_row"] = xavier(256, 1).reshape(1, 256)
    params["fc2_b"] = jnp.full((1, 1), 0.01, jnp.float32)
    return params


# ----------------------------- self checks ------------------------------------

def _bn_ref(x, g, b, relu):
    x = x.astype(jnp.float32)
    m = jnp.mean(x, axis=0, keepdims=True)
    v = jnp.mean((x - m) ** 2, axis=0, keepdims=True)
    y = (x - m) * lax.rsqrt(v + BN_EPS) * g + b
    return jnp.maximum(y, 0.0) if relu else y


def _self_check():
    # Exercise the M-tiled two-pass BN paths (not hit by the tiny end-to-end input).
    k1, k2, k3, k4, k5 = jax.random.split(jax.random.PRNGKey(1), 5)
    x = jax.random.normal(k1, (4100, 128), jnp.float32).astype(ACT_DTYPE)
    g = jax.random.normal(k2, (1, 128), jnp.float32)
    b = jax.random.normal(k3, (1, 128), jnp.float32)
    got = pallas_bn_act(x, g, b, relu=True).astype(jnp.float32)
    assert jnp.allclose(got, _bn_ref(x, g, b, True), rtol=0.1, atol=0.1), "tiled BN"

    x2 = jax.random.normal(k4, (4096, 256), jnp.float32).astype(ACT_DTYPE)
    r2 = jax.random.normal(k5, (4096, 256), jnp.float32).astype(ACT_DTYPE)
    g2 = jnp.ones((1, 256), jnp.float32)
    b2 = jnp.zeros((1, 256), jnp.float32)
    got2 = pallas_bn_add_relu(x2, r2, g2, b2, g2, b2).astype(jnp.float32)
    want2 = jnp.maximum(_bn_ref(x2, g2, b2, False) + _bn_ref(r2, g2, b2, False), 0.0)
    assert jnp.allclose(got2, want2, rtol=0.1, atol=0.1), "tiled BN+add"


# ------------------------------------ main ------------------------------------

if __name__ == "__main__":
    _self_check()

    key = jax.random.PRNGKey(0)
    kp, k1, k2 = jax.random.split(key, 3)
    params = init_params(kp)

    input1 = jax.random.normal(k1, (2, 1, 16, 16), jnp.float32)   # NCHW, 1 channel
    input2 = jax.random.normal(k2, (2, 1, 16, 16), jnp.float32)

    out = jax.jit(siamese_forward)(params, input1, input2)
    out = jax.block_until_ready(out)
    assert out.shape == (2, 1)
    assert bool(jnp.all(jnp.isfinite(out))) and bool(jnp.all((out >= 0) & (out <= 1)))
    print("KERNEL_OK")
</pallas_src>

<mosaic_0001>
module attributes {stable_mosaic.version = 11 : i64} {
  func.func @_channel_stats_kernel(%arg0: i32, %arg1: i32, %arg2: memref<1024x128xbf16, #tpu.memory_space<vmem>>, %arg3: memref<1x128xf32, #tpu.memory_space<vmem>>, %arg4: memref<1x128xf32, #tpu.memory_space<vmem>>) attributes {dimension_semantics = [#tpu.dimension_semantics<parallel>, #tpu.dimension_semantics<arbitrary>], iteration_bounds = array<i64: 1, 5>, scalar_prefetch = 0 : i64, scratch_operands = 0 : i64, tpu.core_type = #tpu.core_type<tc>, window_params = [{transform_indices = @transform_0, window_bounds = array<i64: 1024, 128>}, {transform_indices = @transform_1, window_bounds = array<i64: 1, 128>}, {transform_indices = @transform_2, window_bounds = array<i64: 1, 128>}]} {
    %c0_i32 = arith.constant 0 : i32
    %0 = arith.cmpi eq, %arg1, %c0_i32 : i32
    %1 = arith.extui %0 : i1 to i32
    %c0_i32_0 = arith.constant 0 : i32
    %2 = arith.cmpi ne, %1, %c0_i32_0 : i32
    scf.if %2 {
      %cst_11 = arith.constant 0.000000e+00 : f32
      %16 = vector.broadcast %cst_11 : f32 to vector<1x128xf32>
      %c0_12 = arith.constant 0 : index
      %c0_13 = arith.constant 0 : index
      %17 = vector.load %arg3[%c0_12, %c0_13] : memref<1x128xf32, #tpu.memory_space<vmem>>, vector<1x128xf32>
      tpu.vector_store %arg3[%c0_12, %c0_13], %16 {strides = array<i32>} : memref<1x128xf32, #tpu.memory_space<vmem>>, vector<1x128xf32>,
      %cst_14 = arith.constant 0.000000e+00 : f32
      %18 = vector.broadcast %cst_14 : f32 to vector<1x128xf32>
      %c0_15 = arith.constant 0 : index
      %c0_16 = arith.constant 0 : index
      %19 = vector.load %arg4[%c0_15, %c0_16] : memref<1x128xf32, #tpu.memory_space<vmem>>, vector<1x128xf32>
      tpu.vector_store %arg4[%c0_15, %c0_16], %18 {strides = array<i32>} : memref<1x128xf32, #tpu.memory_space<vmem>>, vector<1x128xf32>,
    } else {
    }
    %c0 = arith.constant 0 : index
    %c0_1 = arith.constant 0 : index
    %3 = vector.load %arg2[%c0, %c0_1] : memref<1024x128xbf16, #tpu.memory_space<vmem>>, vector<1024x128xbf16>
    %4 = arith.extf %3 : vector<1024x128xbf16> to vector<1024x128xf32>
    %c0_2 = arith.constant 0 : index
    %c0_3 = arith.constant 0 : index
    %5 = vector.load %arg3[%c0_2, %c0_3] : memref<1x128xf32, #tpu.memory_space<vmem>>, vector<1x128xf32>
    %cst = arith.constant dense<0.000000e+00> : vector<128xf32>
    %6 = vector.multi_reduction <add>, %4, %cst [0] : vector<1024x128xf32> to vector<128xf32>
    %7 = vector.shape_cast %6 : vector<128xf32> to vector<1x128xf32>
    %8 = arith.addf %5, %7 : vector<1x128xf32>
    %c0_4 = arith.constant 0 : index
    %c0_5 = arith.constant 0 : index
    %9 = vector.load %arg3[%c0_4, %c0_5] : memref<1x128xf32, #tpu.memory_space<vmem>>, vector<1x128xf32>
    tpu.vector_store %arg3[%c0_4, %c0_5], %8 {strides = array<i32>} : memref<1x128xf32, #tpu.memory_space<vmem>>, vector<1x128xf32>,
    %c0_6 = arith.constant 0 : index
    %c0_7 = arith.constant 0 : index
    %10 = vector.load %arg4[%c0_6, %c0_7] : memref<1x128xf32, #tpu.memory_space<vmem>>, vector<1x128xf32>
    %11 = arith.mulf %4, %4 : vector<1024x128xf32>
    %cst_8 = arith.constant dense<0.000000e+00> : vector<128xf32>
    %12 = vector.multi_reduction <add>, %11, %cst_8 [0] : vector<1024x128xf32> to vector<128xf32>
    %13 = vector.shape_cast %12 : vector<128xf32> to vector<1x128xf32>
    %14 = arith.addf %10, %13 : vector<1x128xf32>
    %c0_9 = arith.constant 0 : index
    %c0_10 = arith.constant 0 : index
    %15 = vector.load %arg4[%c0_9, %c0_10] : memref<1x128xf32, #tpu.memory_space<vmem>>, vector<1x128xf32>
    tpu.vector_store %arg4[%c0_9, %c0_10], %14 {strides = array<i32>} : memref<1x128xf32, #tpu.memory_space<vmem>>, vector<1x128xf32>,
    return
  }
  func.func @transform_0(%arg0: i32, %arg1: i32) -> (i32, i32) {
    %c0_i32 = arith.constant 0 : i32
    return %arg1, %arg0 : i32, i32
  }
  func.func @transform_1(%arg0: i32, %arg1: i32) -> (i32, i32) {
    %c0_i32 = arith.constant 0 : i32
    %c0_i32_0 = arith.constant 0 : i32
    return %c0_i32, %arg0 : i32, i32
  }
  func.func @transform_2(%arg0: i32, %arg1: i32) -> (i32, i32) {
    %c0_i32 = arith.constant 0 : i32
    %c0_i32_0 = arith.constant 0 : i32
    return %c0_i32, %arg0 : i32, i32
  }
}

</mosaic_0001>

<bundles_post_ra>
// kernel: tpu_custom_call.1
= control target key start
LH: loop header
LB: loop body
LE: loop exit
PB: predicated region body
PF: predicated region fallthrough
CT: control target
= control target key end

     0   :  { %8 = vsyncpa [#allocation3], 0  ;;  %s1743_s0 = inlined_call_operand.hbm [shape: bf16[5120,128], index: 0, kind: input, shape index: {}]   ;;  %s1744_s1 = inlined_call_operand.hbm [shape: f32[1,128], index: 1, kind: output, shape index: {0}]   ;;  %s1745_s2 = inlined_call_operand.hbm [shape: f32[1,128], index: 2, kind: output, shape index: {1}]  }
   0x1   :  { %10 = vsyncpa [#allocation3 + $0x1], 0 }
   0x2   :  { %11 = vsyncpa [#allocation4], 0 }
   0x3   :  { %12 = vsyncpa [#allocation7], 0  ;;  %s1505_s9 = smov 0   ;;  %s1507_s10 = smov 0  }
   0x4   :  { %s1509_s11 = smov 0   ;;  %s1511_s12 = smov 0  }
   0x5   :  { %s1513_s13 = smov 0   ;;  %s1515_s14 = smov 0  }
   0x6 LB: > { %s935_s15 = sadd.s32 4294967295, %s1482_s14   ;;  %s27_s16 = sadd.s32 1, %s1478_s13  ;;  %s1482_s14 = sphi %s1515_s14, %s18_s14   ;;  %s1478_s13 = sphi %s1513_s13, %s1754_s13   ;;  %s1474_s12 = sphi %s1511_s12, %s1753_s12   ;;  %s1470_s11 = sphi %s1509_s11, %s1752_s11   ;;  %s1466_s10 = sphi %s1507_s10, %s1751_s10   ;;  %s1462_s9 = sphi %s1505_s9, %s1750_s9  }
   0x7   : > { %p28_p0 = scmp.ge.s32.totalorder %s27_s16, 5  ;;  %s39_s17 = sadd.s32 1, %s1470_s11 }
   0x8   : > { %p46_p1 = scmp.ne.s32.totalorder %s1470_s11, %s1466_s10  ;;  %p47_p2 = scmp.eq.s32.totalorder %s1482_s14, 0 }
   0x9   : > { %s1756_s16 = smov (%p28_p0, %s27_s16), 0  ;;  %p52_p4 = scmp.ne.s32.totalorder %s1466_s10, %s1462_s9 }
   0xa   : > { %p1541_p3 = por %p47_p2, %p46_p1  ;;  %s34_s19 = ssub.s32 %s1478_s13, %s1756_s16 }
   0xb   : > { %p53_p5 = scmp.eq.s32.totalorder %s935_s15, 0  ;;  %p37_p6 = scmp.eq.s32.totalorder %s34_s19, 0 }
   0xc   : > { %p1284_p8 = scmp.lt.s32.totalorder %s1482_s14, 5  ;;  %s128_s22 = sand.u32 1, %s1470_s11  }
   0xd   : > { %p1550_p7 = por %p53_p5, %p52_p4  ;;  %s950_s23 = sshll.u32 %s1478_s13, 13 }
   0xe   : > { %s1556_s21 = scalar_select %p37_p6, %s1470_s11, %s39_s17  }
   0xf   : > { %s938_s24 = sshll.u32 %s128_s22, 9  ;;  %s1563_s27 = scalar_lea.hbm %s1743_s0, %s950_s23 }
  0x10   : > { %s132_s28 = scalar_lea.vmem [#allocation2], %s938_s24  ;;  %p1567_p9 = pnand %p1284_p8, %p1541_p3 }
  0x11   : > { %s140_s29 = sshll.u32 %s132_s28, 4  ;;  %s1573_s3 = scalar_lea.sflag [#allocation3], %s128_s22  ;;  %s1571_s29 = int_to_ptr.vmem [resolvable:$true] %s140_s29 }
  0x12   : > { %s1342_s4 = scalar_lea.hbm %s1563_s27, 8192  ;;  %p1344_p11 = pneg %p1567_p9 }
  0x13   : > { %p1343_p10 = scmp.ne.s32.totalorder %s1563_s27, %s1342_s4  ;;  %s1347_s7 = scalar_lea.hbm %s1743_s0, 40960 }
  0x14   : > { %p1348_p0 = scmp.lt.u32.totalorder %s1563_s27, %s1743_s0  ;;  %p1349_p1 = scmp.lt.u32.totalorder %s1347_s7, %s1342_s4 }
  0x15   : > { %p1345_p12 = pnand %p1344_p11, %p1343_p10  ;;  %p1351_p3 = scmp.lt.u32.totalorder %s1342_s4, %s1563_s27 }
  0x16   : > { %p1350_p2 = por %p1349_p1, %p1348_p0 }
  0x17   : > { %p1346_p13 = pneg %p1345_p12 }
  0x18   : > { %p1352_p4 = por %p1351_p3, %p1350_p2 }
  0x1a   : > { %p1353_p5 = pnand %p1352_p4, %p1346_p13 }
  0x1c   : > { %1356 = shalt.err (!%p1353_p5)
}
  0x1d   : > { %s1357_s17 = scalar_lea.vmem %s1571_s29, 8192  ;;  %s1484_s18 = smov [#allocation2]  }
  0x1e   : > { %p1358_p6 = scmp.ne.s32.totalorder %s1571_s29, %s1357_s17  ;;  %s1362_s19 = sshll.u32 %s1484_s18, 4  ;;  %s1363_s19 = int_to_ptr.vmem [resolvable:$false] %s1362_s19 }
  0x1f   : > { %s1364_s22 = scalar_lea.vmem %s1363_s19, 16384  ;;  %p1365_p12 = scmp.lt.s32.totalorder %s1571_s29, %s1363_s19 }
  0x20   : > { %p1360_p8 = pnand %p1358_p6, %p1344_p11  ;;  %p1366_p0 = scmp.lt.s32.totalorder %s1364_s22, %s1357_s17 }
  0x22   : > { %p1361_p10 = pneg %p1360_p8  ;;  %p1367_p1 = por %p1366_p0, %p1365_p12 }
  0x24   : > { %p1368_p2 = pnand %p1367_p1, %p1361_p10 }
  0x26   : > { %1371 = shalt.err (!%p1368_p2)
}
  0x27   : > { %s1485_s23 = smov 64   ;;  %s1486_s24 = smov 4  }
  0x28   : > { %1283 = dma.hbm_to_vmem [thread:$0]  (!%p1567_p9), %s1563_s27, 8192, %s1571_s29, %s1573_s3, %s1485_s23, %s1485_s23, %s1486_s24  }
  0x29   : > { %p941_p11 = scmp.ge.s32.totalorder %s1482_s14, 1  ;;  %p148_p13 = scmp.lt.s32.totalorder %s1482_s14, 6 }
  0x2b   : > { %p149_p3 = pnand %p941_p11, %p148_p13 }
  0x2c   : > { %s154_s25 = sand.u32 (!%p149_p3), 1, %s1466_s10  }
  0x2d   : > { %152 = sbr.rel (%p149_p3) target bundleno = 380 (0x17c), region = 24  ;;  %s942_s26 = sshll.u32 (!%p149_p3), %s154_s25, 9 }
  0x2e   : > { %s155_s28 = scalar_lea.sflag (!%p149_p3), [#allocation3], %s154_s25  ;;  %s1604_s4 = scalar_lea.vmem (!%p149_p3), [#allocation2], %s942_s26 }
  0x34   : > { %1449 = dma.done.wait (%p1550_p7), %s155_s28, 8192  }
  0x35   : > { %1451 = vsyncadd (%p1550_p7), %s155_s28, 4294959104  ;;  %p943_p4 = scmp.ne.s32.totalorder %s1474_s12, 0 }
  0x36   : > { %v1487_v0 = vmov (!%p943_p4), 0.0  }
  0x37   : > { %178 = sbr.rel (%p943_p4) target bundleno = 62 (0x3e), region = 32  ;;  %179 = vst [vmem:[#allocation5] sm:$0x1] (!%p943_p4), %v1487_v0  ;;  %180 = vst [vmem:[#allocation6] sm:$0x1] (!%p943_p4), %v1487_v0 }
  0x3e PF: > { %v952_v1 = vld [vmem:[%s1604_s4] sm:$0xff]   ;;  %v1207_v2 = vld [vmem:[%s1604_s4 + $0x8] sm:$0xff]   ;;  %v1208_v7 = vld [vmem:[%s1604_s4 + $0x10] sm:$0xff]   ;;  %s1488_s12 = smov [#allocation5]   ;;  %p1677_p7 = scmp.eq.s32.totalorder %s935_s15, 4 }
  0x3f   : > { %v953_v3 = vunpack.c.l.bf16 %v952_v1  ;;  %v954_v4 = vunpack.c.h.bf16 %v952_v1  ;;  %v957_v5 = vunpack.c.l.bf16 %v1207_v2  ;;  %v958_v8 = vunpack.c.h.bf16 %v1207_v2  ;;  %v1209_v12 = vld [vmem:[%s1604_s4 + $0x18] sm:$0xff]   ;;  %v1210_v17 = vld [vmem:[%s1604_s4 + $0x20] sm:$0xff]   ;;  %v1211_v22 = vld [vmem:[%s1604_s4 + $0x28] sm:$0xff]   ;;  %s846_s20 = sshll.u32 %s1488_s12, 4  ;;  %s847_s20 = int_to_ptr.vmem [resolvable:$true] %s846_s20 }
  0x40   : > { %v961_v10 = vunpack.c.l.bf16 %v1208_v7  ;;  %v962_v13 = vunpack.c.h.bf16 %v1208_v7  ;;  %v965_v15 = vunpack.c.l.bf16 %v1209_v12  ;;  %v966_v18 = vunpack.c.h.bf16 %v1209_v12  ;;  %v1212_v27 = vld [vmem:[%s1604_s4 + $0x30] sm:$0xff]   ;;  %v1213_v35 = vld [vmem:[%s1604_s4 + $0x38] sm:$0xff]   ;;  %v1214_v44 = vld [vmem:[%s1604_s4 + $0x40] sm:$0xff]   ;;  %s1372_s29 = scalar_lea.vmem %s847_s20, 16  ;;  %s1378_s30 = scalar_lea.vmem %s847_s20, 32 }
  0x41   : > { %v438_v6 = vadd.f32 %v954_v4, %v953_v3  ;;  %v969_v20 = vunpack.c.l.bf16 %v1210_v17  ;;  %v970_v23 = vunpack.c.h.bf16 %v1210_v17  ;;  %v973_v25 = vunpack.c.l.bf16 %v1211_v22  ;;  %v1215_v53 = vld [vmem:[%s1604_s4 + $0x48] sm:$0xff]   ;;  %v1216_v62 = vld [vmem:[%s1604_s4 + $0x50] sm:$0xff]   ;;  %v1217_v7 = vld [vmem:[%s1604_s4 + $0x58] sm:$0xff]   ;;  %p1373_p9 = scmp.ne.s32.totalorder %s847_s20, %s1372_s29  ;;  %p1379_p8 = scmp.lt.s32.totalorder %s847_s20, %s847_s20 }
  0x42   : > { %v574_v28 = vmul.f32 %v953_v3, %v953_v3  ;;  %v575_v29 = vmul.f32 %v954_v4, %v954_v4  ;;  %v974_v30 = vunpack.c.h.bf16 %v1211_v22  ;;  %v576_v32 = vmul.f32 %v957_v5, %v957_v5  ;;  %p1380_p10 = scmp.lt.s32.totalorder %s1378_s30, %s1372_s29 }
  0x43   : > { %v439_v9 = vadd.f32 %v957_v5, %v438_v6  ;;  %v977_v33 = vunpack.c.l.bf16 %v1212_v27  ;;  %v577_v36 = vmul.f32 %v958_v8, %v958_v8  ;;  %v978_v38 = vunpack.c.h.bf16 %v1212_v27  ;;  %p1374_p5 = pnand %p1373_p9, %p1677_p7 }
  0x44   : > { %v702_v37 = vadd.f32 %v575_v29, %v574_v28  ;;  %v578_v40 = vmul.f32 %v961_v10, %v961_v10  ;;  %v981_v42 = vunpack.c.l.bf16 %v1213_v35  ;;  %v579_v45 = vmul.f32 %v962_v13, %v962_v13  ;;  %p1381_p12 = por %p1380_p10, %p1379_p8 }
  0x45   : > { %v440_v11 = vadd.f32 %v958_v8, %v439_v9  ;;  %v982_v47 = vunpack.c.h.bf16 %v1213_v35  ;;  %v580_v49 = vmul.f32 %v965_v15, %v965_v15  ;;  %v985_v51 = vunpack.c.l.bf16 %v1214_v44  ;;  %p1375_p6 = pneg %p1374_p5 }
  0x46   : > { %v703_v41 = vadd.f32 %v702_v37, %v576_v32  ;;  %v581_v54 = vmul.f32 %v966_v18, %v966_v18  ;;  %v986_v56 = vunpack.c.h.bf16 %v1214_v44  ;;  %v582_v58 = vmul.f32 %v969_v20, %v969_v20 }
  0x47   : > { %v441_v14 = vadd.f32 %v961_v10, %v440_v11  ;;  %v989_v60 = vunpack.c.l.bf16 %v1215_v53  ;;  %v583_v63 = vmul.f32 %v970_v23, %v970_v23  ;;  %v990_v1 = vunpack.c.h.bf16 %v1215_v53  ;;  %p1382_p0 = pnand %p1381_p12, %p1375_p6 }
  0x48   : > { %v704_v46 = vadd.f32 %v703_v41, %v577_v36  ;;  %v584_v3 = vmul.f32 %v973_v25, %v973_v25  ;;  %v993_v5 = vunpack.c.l.bf16 %v1216_v62  ;;  %v585_v8 = vmul.f32 %v974_v30, %v974_v30 }
  0x49   : > { %v442_v16 = vadd.f32 %v962_v13, %v441_v14  ;;  %v994_v10 = vunpack.c.h.bf16 %v1216_v62  ;;  %v586_v12 = vmul.f32 %v977_v33, %v977_v33  ;;  %v997_v14 = vunpack.c.l.bf16 %v1217_v7 }
  0x4a   : > { %v705_v50 = vadd.f32 %v704_v46, %v578_v40  ;;  %v587_v17 = vmul.f32 %v978_v38, %v978_v38  ;;  %v591_v35 = vmul.f32 %v986_v56, %v986_v56  ;;  %v593_v44 = vmul.f32 %v990_v1, %v990_v1 }
  0x4b   : > { %v443_v19 = vadd.f32 %v965_v15, %v442_v16  ;;  %v1218_v16 = vld [vmem:[%s1604_s4 + $0x60] sm:$0xff]   ;;  %v595_v53 = vmul.f32 %v994_v10, %v994_v10 }
  0x4c   : > { %v706_v55 = vadd.f32 %v705_v50, %v579_v45  ;;  %v1002_v28 = vunpack.c.h.bf16 %v1218_v16 }
  0x4d   : > { %v444_v21 = vadd.f32 %v966_v18, %v443_v19  ;;  %v998_v19 = vunpack.c.h.bf16 %v1217_v7 }
  0x4e   : > { %v707_v59 = vadd.f32 %v706_v55, %v580_v49  ;;  %v599_v7 = vmul.f32 %v1002_v28, %v1002_v28 }
  0x4f   : > { %v445_v24 = vadd.f32 %v969_v20, %v444_v21  ;;  %v588_v21 = vmul.f32 %v981_v42, %v981_v42  ;;  %v597_v62 = vmul.f32 %v998_v19, %v998_v19 }
  0x50   : > { %v708_v0 = vadd.f32 %v707_v59, %v581_v54 }
  0x51   : > { %v446_v26 = vadd.f32 %v970_v23, %v445_v24  ;;  %v1001_v23 = vunpack.c.l.bf16 %v1218_v16 }
  0x52   : > { %v709_v4 = vadd.f32 %v708_v0, %v582_v58 }
  0x53   : > { %v447_v31 = vadd.f32 %v973_v25, %v446_v26  ;;  %v1219_v25 = vld [vmem:[%s1604_s4 + $0x68] sm:$0xff]   ;;  %v589_v26 = vmul.f32 %v982_v47, %v982_v47 }
  0x54   : > { %v710_v9 = vadd.f32 %v709_v4, %v583_v63  ;;  %v1005_v32 = vunpack.c.l.bf16 %v1219_v25  ;;  %v1006_v37 = vunpack.c.h.bf16 %v1219_v25 }
  0x55   : > { %v448_v34 = vadd.f32 %v974_v30, %v447_v31  ;;  %v590_v30 = vmul.f32 %v985_v51, %v985_v51 }
  0x56   : > { %v711_v13 = vadd.f32 %v710_v9, %v584_v3  ;;  %v601_v16 = vmul.f32 %v1006_v37, %v1006_v37 }
  0x57   : > { %v449_v39 = vadd.f32 %v977_v33, %v448_v34  ;;  %v1220_v34 = vld [vmem:[%s1604_s4 + $0x70] sm:$0xff]  }
  0x58   : > { %v712_v18 = vadd.f32 %v711_v13, %v585_v8  ;;  %v1009_v41 = vunpack.c.l.bf16 %v1220_v34  ;;  %v1010_v46 = vunpack.c.h.bf16 %v1220_v34 }
  0x59   : > { %v450_v43 = vadd.f32 %v978_v38, %v449_v39  ;;  %v592_v39 = vmul.f32 %v989_v60, %v989_v60 }
  0x5a   : > { %v713_v22 = vadd.f32 %v712_v18, %v586_v12  ;;  %v603_v25 = vmul.f32 %v1010_v46, %v1010_v46 }
  0x5b   : > { %v451_v48 = vadd.f32 %v981_v42, %v450_v43  ;;  %v1221_v43 = vld [vmem:[%s1604_s4 + $0x78] sm:$0xff]  }
  0x5c   : > { %v714_v27 = vadd.f32 %v713_v22, %v587_v17  ;;  %v1013_v50 = vunpack.c.l.bf16 %v1221_v43  ;;  %v1014_v55 = vunpack.c.h.bf16 %v1221_v43 }
  0x5d   : > { %v452_v52 = vadd.f32 %v982_v47, %v451_v48  ;;  %v594_v48 = vmul.f32 %v993_v5, %v993_v5 }
  0x5e   : > { %v715_v31 = vadd.f32 %v714_v27, %v588_v21  ;;  %v605_v34 = vmul.f32 %v1014_v55, %v1014_v55 }
  0x5f   : > { %v453_v57 = vadd.f32 %v985_v51, %v452_v52  ;;  %v1222_v52 = vld [vmem:[%s1604_s4 + $0x80] sm:$0xff]  }
  0x60   : > { %v716_v36 = vadd.f32 %v715_v31, %v589_v26  ;;  %v1017_v59 = vunpack.c.l.bf16 %v1222_v52  ;;  %v1018_v0 = vunpack.c.h.bf16 %v1222_v52 }
  0x61   : > { %v454_v61 = vadd.f32 %v986_v56, %v453_v57  ;;  %v596_v57 = vmul.f32 %v997_v14, %v997_v14 }
  0x62   : > { %v717_v40 = vadd.f32 %v716_v36, %v590_v30  ;;  %v607_v43 = vmul.f32 %v1018_v0, %v1018_v0 }
  0x63   : > { %v455_v2 = vadd.f32 %v989_v60, %v454_v61  ;;  %v1223_v61 = vld [vmem:[%s1604_s4 + $0x88] sm:$0xff]  }
  0x64   : > { %v718_v45 = vadd.f32 %v717_v40, %v591_v35  ;;  %v1021_v4 = vunpack.c.l.bf16 %v1223_v61  ;;  %v1022_v9 = vunpack.c.h.bf16 %v1223_v61 }
  0x65   : > { %v456_v6 = vadd.f32 %v990_v1, %v455_v2  ;;  %v598_v2 = vmul.f32 %v1001_v23, %v1001_v23 }
  0x66   : > { %v719_v49 = vadd.f32 %v718_v45, %v592_v39  ;;  %v609_v52 = vmul.f32 %v1022_v9, %v1022_v9 }
  0x67   : > { %v457_v11 = vadd.f32 %v993_v5, %v456_v6  ;;  %v1224_v6 = vld [vmem:[%s1604_s4 + $0x90] sm:$0xff]  }
  0x68   : > { %v720_v54 = vadd.f32 %v719_v49, %v593_v44  ;;  %v1025_v13 = vunpack.c.l.bf16 %v1224_v6  ;;  %v1026_v18 = vunpack.c.h.bf16 %v1224_v6 }
  0x69   : > { %v458_v15 = vadd.f32 %v994_v10, %v457_v11  ;;  %v600_v11 = vmul.f32 %v1005_v32, %v1005_v32 }
  0x6a   : > { %v721_v58 = vadd.f32 %v720_v54, %v594_v48  ;;  %v611_v61 = vmul.f32 %v1026_v18, %v1026_v18 }
  0x6b   : > { %v459_v20 = vadd.f32 %v997_v14, %v458_v15  ;;  %v1225_v15 = vld [vmem:[%s1604_s4 + $0x98] sm:$0xff]  }
  0x6c   : > { %v722_v63 = vadd.f32 %v721_v58, %v595_v53  ;;  %v1029_v22 = vunpack.c.l.bf16 %v1225_v15  ;;  %v1030_v27 = vunpack.c.h.bf16 %v1225_v15 }
  0x6d   : > { %v460_v24 = vadd.f32 %v998_v19, %v459_v20  ;;  %v602_v20 = vmul.f32 %v1009_v41, %v1009_v41 }
  0x6e   : > { %v723_v3 = vadd.f32 %v722_v63, %v596_v57  ;;  %v613_v6 = vmul.f32 %v1030_v27, %v1030_v27 }
  0x6f   : > { %v461_v29 = vadd.f32 %v1001_v23, %v460_v24  ;;  %v1226_v24 = vld [vmem:[%s1604_s4 + $0xa0] sm:$0xff]  }
  0x70   : > { %v724_v8 = vadd.f32 %v723_v3, %v597_v62  ;;  %v1033_v31 = vunpack.c.l.bf16 %v1226_v24  ;;  %v1034_v36 = vunpack.c.h.bf16 %v1226_v24 }
  0x71   : > { %v462_v33 = vadd.f32 %v1002_v28, %v461_v29  ;;  %v604_v29 = vmul.f32 %v1013_v50, %v1013_v50 }
  0x72   : > { %v725_v12 = vadd.f32 %v724_v8, %v598_v2  ;;  %v615_v15 = vmul.f32 %v1034_v36, %v1034_v36 }
  0x73   : > { %v463_v38 = vadd.f32 %v1005_v32, %v462_v33  ;;  %v1227_v33 = vld [vmem:[%s1604_s4 + $0xa8] sm:$0xff]  }
  0x74   : > { %v726_v17 = vadd.f32 %v725_v12, %v599_v7  ;;  %v1037_v40 = vunpack.c.l.bf16 %v1227_v33  ;;  %v1038_v45 = vunpack.c.h.bf16 %v1227_v33 }
  0x75   : > { %v464_v42 = vadd.f32 %v1006_v37, %v463_v38  ;;  %v606_v38 = vmul.f32 %v1017_v59, %v1017_v59 }
  0x76   : > { %v727_v21 = vadd.f32 %v726_v17, %v600_v11  ;;  %v617_v24 = vmul.f32 %v1038_v45, %v1038_v45 }
  0x77   : > { %v465_v47 = vadd.f32 %v1009_v41, %v464_v42  ;;  %v1228_v42 = vld [vmem:[%s1604_s4 + $0xb0] sm:$0xff]  }
  0x78   : > { %v728_v26 = vadd.f32 %v727_v21, %v601_v16  ;;  %v1041_v49 = vunpack.c.l.bf16 %v1228_v42  ;;  %v1042_v54 = vunpack.c.h.bf16 %v1228_v42 }
  0x79   : > { %v466_v51 = vadd.f32 %v1010_v46, %v465_v47  ;;  %v608_v47 = vmul.f32 %v1021_v4, %v1021_v4 }
  0x7a   : > { %v729_v30 = vadd.f32 %v728_v26, %v602_v20  ;;  %v619_v33 = vmul.f32 %v1042_v54, %v1042_v54 }
  0x7b   : > { %v467_v56 = vadd.f32 %v1013_v50, %v466_v51  ;;  %v1229_v51 = vld [vmem:[%s1604_s4 + $0xb8] sm:$0xff]  }
  0x7c   : > { %v730_v35 = vadd.f32 %v729_v30, %v603_v25  ;;  %v1045_v58 = vunpack.c.l.bf16 %v1229_v51  ;;  %v1046_v63 = vunpack.c.h.bf16 %v1229_v51 }
  0x7d   : > { %v468_v60 = vadd.f32 %v1014_v55, %v467_v56  ;;  %v610_v56 = vmul.f32 %v1025_v13, %v1025_v13 }
  0x7e   : > { %v731_v39 = vadd.f32 %v730_v35, %v604_v29  ;;  %v621_v42 = vmul.f32 %v1046_v63, %v1046_v63 }
  0x7f   : > { %v469_v1 = vadd.f32 %v1017_v59, %v468_v60  ;;  %v1230_v60 = vld [vmem:[%s1604_s4 + $0xc0] sm:$0xff]  }
  0x80   : > { %v732_v44 = vadd.f32 %v731_v39, %v605_v34  ;;  %v1049_v3 = vunpack.c.l.bf16 %v1230_v60  ;;  %v1050_v8 = vunpack.c.h.bf16 %v1230_v60 }
  0x81   : > { %v470_v5 = vadd.f32 %v1018_v0, %v469_v1  ;;  %v612_v1 = vmul.f32 %v1029_v22, %v1029_v22 }
  0x82   : > { %v733_v48 = vadd.f32 %v732_v44, %v606_v38  ;;  %v623_v51 = vmul.f32 %v1050_v8, %v1050_v8 }
  0x83   : > { %v471_v10 = vadd.f32 %v1021_v4, %v470_v5  ;;  %v1231_v5 = vld [vmem:[%s1604_s4 + $0xc8] sm:$0xff]  }
  0x84   : > { %v734_v53 = vadd.f32 %v733_v48, %v607_v43  ;;  %v1053_v12 = vunpack.c.l.bf16 %v1231_v5  ;;  %v1054_v17 = vunpack.c.h.bf16 %v1231_v5 }
  0x85   : > { %v472_v14 = vadd.f32 %v1022_v9, %v471_v10  ;;  %v614_v10 = vmul.f32 %v1033_v31, %v1033_v31 }
  0x86   : > { %v735_v57 = vadd.f32 %v734_v53, %v608_v47  ;;  %v625_v60 = vmul.f32 %v1054_v17, %v1054_v17 }
  0x87   : > { %v473_v19 = vadd.f32 %v1025_v13, %v472_v14  ;;  %v1232_v14 = vld [vmem:[%s1604_s4 + $0xd0] sm:$0xff]  }
  0x88   : > { %v736_v62 = vadd.f32 %v735_v57, %v609_v52  ;;  %v1057_v21 = vunpack.c.l.bf16 %v1232_v14  ;;  %v1058_v26 = vunpack.c.h.bf16 %v1232_v14 }
  0x89   : > { %v474_v23 = vadd.f32 %v1026_v18, %v473_v19  ;;  %v616_v19 = vmul.f32 %v1037_v40, %v1037_v40 }
  0x8a   : > { %v737_v2 = vadd.f32 %v736_v62, %v610_v56  ;;  %v627_v5 = vmul.f32 %v1058_v26, %v1058_v26 }
  0x8b   : > { %v475_v28 = vadd.f32 %v1029_v22, %v474_v23  ;;  %v1233_v23 = vld [vmem:[%s1604_s4 + $0xd8] sm:$0xff]  }
  0x8c   : > { %v738_v7 = vadd.f32 %v737_v2, %v611_v61  ;;  %v1061_v30 = vunpack.c.l.bf16 %v1233_v23  ;;  %v1062_v35 = vunpack.c.h.bf16 %v1233_v23 }
  0x8d   : > { %v476_v32 = vadd.f32 %v1030_v27, %v475_v28  ;;  %v618_v28 = vmul.f32 %v1041_v49, %v1041_v49 }
  0x8e   : > { %v739_v11 = vadd.f32 %v738_v7, %v612_v1  ;;  %v629_v14 = vmul.f32 %v1062_v35, %v1062_v35 }
  0x8f   : > { %v477_v37 = vadd.f32 %v1033_v31, %v476_v32  ;;  %v1234_v32 = vld [vmem:[%s1604_s4 + $0xe0] sm:$0xff]  }
  0x90   : > { %v740_v16 = vadd.f32 %v739_v11, %v613_v6  ;;  %v1065_v39 = vunpack.c.l.bf16 %v1234_v32  ;;  %v1066_v44 = vunpack.c.h.bf16 %v1234_v32 }
  0x91   : > { %v478_v41 = vadd.f32 %v1034_v36, %v477_v37  ;;  %v620_v37 = vmul.f32 %v1045_v58, %v1045_v58 }
  0x92   : > { %v741_v20 = vadd.f32 %v740_v16, %v614_v10  ;;  %v631_v23 = vmul.f32 %v1066_v44, %v1066_v44 }
  0x93   : > { %v479_v46 = vadd.f32 %v1037_v40, %v478_v41  ;;  %v1235_v41 = vld [vmem:[%s1604_s4 + $0xe8] sm:$0xff]  }
  0x94   : > { %v742_v25 = vadd.f32 %v741_v20, %v615_v15  ;;  %v1069_v48 = vunpack.c.l.bf16 %v1235_v41  ;;  %v1070_v53 = vunpack.c.h.bf16 %v1235_v41 }
  0x95   : > { %v480_v50 = vadd.f32 %v1038_v45, %v479_v46  ;;  %v622_v46 = vmul.f32 %v1049_v3, %v1049_v3 }
  0x96   : > { %v743_v29 = vadd.f32 %v742_v25, %v616_v19  ;;  %v633_v32 = vmul.f32 %v1070_v53, %v1070_v53 }
  0x97   : > { %v481_v55 = vadd.f32 %v1041_v49, %v480_v50  ;;  %v1236_v50 = vld [vmem:[%s1604_s4 + $0xf0] sm:$0xff]  }
  0x98   : > { %v744_v34 = vadd.f32 %v743_v29, %v617_v24  ;;  %v1073_v57 = vunpack.c.l.bf16 %v1236_v50  ;;  %v1074_v62 = vunpack.c.h.bf16 %v1236_v50 }
  0x99   : > { %v482_v59 = vadd.f32 %v1042_v54, %v481_v55  ;;  %v624_v55 = vmul.f32 %v1053_v12, %v1053_v12 }
  0x9a   : > { %v745_v38 = vadd.f32 %v744_v34, %v618_v28  ;;  %v635_v41 = vmul.f32 %v1074_v62, %v1074_v62 }
  0x9b   : > { %v483_v0 = vadd.f32 %v1045_v58, %v482_v59  ;;  %v1237_v59 = vld [vmem:[%s1604_s4 + $0xf8] sm:$0xff]  }
  0x9c   : > { %v746_v43 = vadd.f32 %v745_v38, %v619_v33  ;;  %v1077_v2 = vunpack.c.l.bf16 %v1237_v59  ;;  %v1078_v7 = vunpack.c.h.bf16 %v1237_v59 }
  0x9d   : > { %v484_v4 = vadd.f32 %v1046_v63, %v483_v0  ;;  %v626_v0 = vmul.f32 %v1057_v21, %v1057_v21 }
  0x9e   : > { %v747_v47 = vadd.f32 %v746_v43, %v620_v37  ;;  %v637_v50 = vmul.f32 %v1078_v7, %v1078_v7 }
  0x9f   : > { %v485_v9 = vadd.f32 %v1049_v3, %v484_v4  ;;  %v1238_v4 = vld [vmem:[%s1604_s4 + $0x100] sm:$0xff]  }
  0xa0   : > { %v748_v52 = vadd.f32 %v747_v47, %v621_v42  ;;  %v1081_v11 = vunpack.c.l.bf16 %v1238_v4  ;;  %v1082_v16 = vunpack.c.h.bf16 %v1238_v4 }
  0xa1   : > { %v486_v13 = vadd.f32 %v1050_v8, %v485_v9  ;;  %v628_v9 = vmul.f32 %v1061_v30, %v1061_v30 }
  0xa2   : > { %v749_v56 = vadd.f32 %v748_v52, %v622_v46  ;;  %v639_v59 = vmul.f32 %v1082_v16, %v1082_v16 }
  0xa3   : > { %v487_v18 = vadd.f32 %v1053_v12, %v486_v13  ;;  %v1239_v13 = vld [vmem:[%s1604_s4 + $0x108] sm:$0xff]  }
  0xa4   : > { %v750_v61 = vadd.f32 %v749_v56, %v623_v51  ;;  %v1085_v20 = vunpack.c.l.bf16 %v1239_v13  ;;  %v1086_v25 = vunpack.c.h.bf16 %v1239_v13 }
  0xa5   : > { %v488_v22 = vadd.f32 %v1054_v17, %v487_v18  ;;  %v630_v18 = vmul.f32 %v1065_v39, %v1065_v39 }
  0xa6   : > { %v751_v1 = vadd.f32 %v750_v61, %v624_v55  ;;  %v641_v4 = vmul.f32 %v1086_v25, %v1086_v25 }
  0xa7   : > { %v489_v27 = vadd.f32 %v1057_v21, %v488_v22  ;;  %v1240_v22 = vld [vmem:[%s1604_s4 + $0x110] sm:$0xff]  }
  0xa8   : > { %v752_v6 = vadd.f32 %v751_v1, %v625_v60  ;;  %v1089_v29 = vunpack.c.l.bf16 %v1240_v22  ;;  %v1090_v34 = vunpack.c.h.bf16 %v1240_v22 }
  0xa9   : > { %v490_v31 = vadd.f32 %v1058_v26, %v489_v27  ;;  %v632_v27 = vmul.f32 %v1069_v48, %v1069_v48 }
  0xaa   : > { %v753_v10 = vadd.f32 %v752_v6, %v626_v0  ;;  %v643_v13 = vmul.f32 %v1090_v34, %v1090_v34 }
  0xab   : > { %v491_v36 = vadd.f32 %v1061_v30, %v490_v31  ;;  %v1241_v31 = vld [vmem:[%s1604_s4 + $0x118] sm:$0xff]  }
  0xac   : > { %v754_v15 = vadd.f32 %v753_v10, %v627_v5  ;;  %v1093_v38 = vunpack.c.l.bf16 %v1241_v31  ;;  %v1094_v43 = vunpack.c.h.bf16 %v1241_v31 }
  0xad   : > { %v492_v40 = vadd.f32 %v1062_v35, %v491_v36  ;;  %v634_v36 = vmul.f32 %v1073_v57, %v1073_v57 }
  0xae   : > { %v755_v19 = vadd.f32 %v754_v15, %v628_v9  ;;  %v645_v22 = vmul.f32 %v1094_v43, %v1094_v43 }
  0xaf   : > { %v493_v45 = vadd.f32 %v1065_v39, %v492_v40  ;;  %v1242_v40 = vld [vmem:[%s1604_s4 + $0x120] sm:$0xff]  }
  0xb0   : > { %v756_v24 = vadd.f32 %v755_v19, %v629_v14  ;;  %v1097_v47 = vunpack.c.l.bf16 %v1242_v40  ;;  %v1098_v52 = vunpack.c.h.bf16 %v1242_v40 }
  0xb1   : > { %v494_v49 = vadd.f32 %v1066_v44, %v493_v45  ;;  %v636_v45 = vmul.f32 %v1077_v2, %v1077_v2 }
  0xb2   : > { %v757_v28 = vadd.f32 %v756_v24, %v630_v18  ;;  %v647_v31 = vmul.f32 %v1098_v52, %v1098_v52 }
  0xb3   : > { %v495_v54 = vadd.f32 %v1069_v48, %v494_v49  ;;  %v1243_v49 = vld [vmem:[%s1604_s4 + $0x128] sm:$0xff]  }
  0xb4   : > { %v758_v33 = vadd.f32 %v757_v28, %v631_v23  ;;  %v1101_v56 = vunpack.c.l.bf16 %v1243_v49  ;;  %v1102_v61 = vunpack.c.h.bf16 %v1243_v49 }
  0xb5   : > { %v496_v58 = vadd.f32 %v1070_v53, %v495_v54  ;;  %v638_v54 = vmul.f32 %v1081_v11, %v1081_v11 }
  0xb6   : > { %v759_v37 = vadd.f32 %v758_v33, %v632_v27  ;;  %v649_v40 = vmul.f32 %v1102_v61, %v1102_v61 }
  0xb7   : > { %v497_v63 = vadd.f32 %v1073_v57, %v496_v58  ;;  %v1244_v58 = vld [vmem:[%s1604_s4 + $0x130] sm:$0xff]  }
  0xb8   : > { %v760_v42 = vadd.f32 %v759_v37, %v633_v32  ;;  %v1105_v1 = vunpack.c.l.bf16 %v1244_v58  ;;  %v1106_v6 = vunpack.c.h.bf16 %v1244_v58 }
  0xb9   : > { %v498_v3 = vadd.f32 %v1074_v62, %v497_v63  ;;  %v640_v63 = vmul.f32 %v1085_v20, %v1085_v20 }
  0xba   : > { %v761_v46 = vadd.f32 %v760_v42, %v634_v36  ;;  %v651_v49 = vmul.f32 %v1106_v6, %v1106_v6 }
  0xbb   : > { %v499_v8 = vadd.f32 %v1077_v2, %v498_v3  ;;  %v1245_v3 = vld [vmem:[%s1604_s4 + $0x138] sm:$0xff]  }
  0xbc   : > { %v762_v51 = vadd.f32 %v761_v46, %v635_v41  ;;  %v1109_v10 = vunpack.c.l.bf16 %v1245_v3  ;;  %v1110_v15 = vunpack.c.h.bf16 %v1245_v3 }
  0xbd   : > { %v500_v12 = vadd.f32 %v1078_v7, %v499_v8  ;;  %v642_v8 = vmul.f32 %v1089_v29, %v1089_v29 }
  0xbe   : > { %v763_v55 = vadd.f32 %v762_v51, %v636_v45  ;;  %v653_v58 = vmul.f32 %v1110_v15, %v1110_v15 }
  0xbf   : > { %v501_v17 = vadd.f32 %v1081_v11, %v500_v12  ;;  %v1246_v12 = vld [vmem:[%s1604_s4 + $0x140] sm:$0xff]  }
  0xc0   : > { %v764_v60 = vadd.f32 %v763_v55, %v637_v50  ;;  %v1113_v19 = vunpack.c.l.bf16 %v1246_v12  ;;  %v1114_v24 = vunpack.c.h.bf16 %v1246_v12 }
  0xc1   : > { %v502_v21 = vadd.f32 %v1082_v16, %v501_v17  ;;  %v644_v17 = vmul.f32 %v1093_v38, %v1093_v38 }
  0xc2   : > { %v765_v0 = vadd.f32 %v764_v60, %v638_v54  ;;  %v655_v3 = vmul.f32 %v1114_v24, %v1114_v24 }
  0xc3   : > { %v503_v26 = vadd.f32 %v1085_v20, %v502_v21  ;;  %v1247_v21 = vld [vmem:[%s1604_s4 + $0x148] sm:$0xff]  }
  0xc4   : > { %v766_v5 = vadd.f32 %v765_v0, %v639_v59  ;;  %v1117_v28 = vunpack.c.l.bf16 %v1247_v21  ;;  %v1118_v33 = vunpack.c.h.bf16 %v1247_v21 }
  0xc5   : > { %v504_v30 = vadd.f32 %v1086_v25, %v503_v26  ;;  %v646_v26 = vmul.f32 %v1097_v47, %v1097_v47 }
  0xc6   : > { %v767_v9 = vadd.f32 %v766_v5, %v640_v63  ;;  %v657_v12 = vmul.f32 %v1118_v33, %v1118_v33 }
  0xc7   : > { %v505_v35 = vadd.f32 %v1089_v29, %v504_v30  ;;  %v1248_v30 = vld [vmem:[%s1604_s4 + $0x150] sm:$0xff]  }
  0xc8   : > { %v768_v14 = vadd.f32 %v767_v9, %v641_v4  ;;  %v1121_v37 = vunpack.c.l.bf16 %v1248_v30  ;;  %v1122_v42 = vunpack.c.h.bf16 %v1248_v30 }
  0xc9   : > { %v506_v39 = vadd.f32 %v1090_v34, %v505_v35  ;;  %v648_v35 = vmul.f32 %v1101_v56, %v1101_v56 }
  0xca   : > { %v769_v18 = vadd.f32 %v768_v14, %v642_v8  ;;  %v659_v21 = vmul.f32 %v1122_v42, %v1122_v42 }
  0xcb   : > { %v507_v44 = vadd.f32 %v1093_v38, %v506_v39  ;;  %v1249_v39 = vld [vmem:[%s1604_s4 + $0x158] sm:$0xff]  }
  0xcc   : > { %v770_v23 = vadd.f32 %v769_v18, %v643_v13  ;;  %v1125_v46 = vunpack.c.l.bf16 %v1249_v39  ;;  %v1126_v51 = vunpack.c.h.bf16 %v1249_v39 }
  0xcd   : > { %v508_v48 = vadd.f32 %v1094_v43, %v507_v44  ;;  %v650_v44 = vmul.f32 %v1105_v1, %v1105_v1 }
  0xce   : > { %v771_v27 = vadd.f32 %v770_v23, %v644_v17  ;;  %v661_v30 = vmul.f32 %v1126_v51, %v1126_v51 }
  0xcf   : > { %v509_v53 = vadd.f32 %v1097_v47, %v508_v48  ;;  %v1250_v48 = vld [vmem:[%s1604_s4 + $0x160] sm:$0xff]  }
  0xd0   : > { %v772_v32 = vadd.f32 %v771_v27, %v645_v22  ;;  %v1129_v55 = vunpack.c.l.bf16 %v1250_v48  ;;  %v1130_v60 = vunpack.c.h.bf16 %v1250_v48 }
  0xd1   : > { %v510_v57 = vadd.f32 %v1098_v52, %v509_v53  ;;  %v652_v53 = vmul.f32 %v1109_v10, %v1109_v10 }
  0xd2   : > { %v773_v36 = vadd.f32 %v772_v32, %v646_v26  ;;  %v663_v39 = vmul.f32 %v1130_v60, %v1130_v60 }
  0xd3   : > { %v511_v62 = vadd.f32 %v1101_v56, %v510_v57  ;;  %v1251_v57 = vld [vmem:[%s1604_s4 + $0x168] sm:$0xff]  }
  0xd4   : > { %v774_v41 = vadd.f32 %v773_v36, %v647_v31  ;;  %v1133_v0 = vunpack.c.l.bf16 %v1251_v57  ;;  %v1134_v5 = vunpack.c.h.bf16 %v1251_v57 }
  0xd5   : > { %v512_v2 = vadd.f32 %v1102_v61, %v511_v62  ;;  %v654_v62 = vmul.f32 %v1113_v19, %v1113_v19 }
  0xd6   : > { %v775_v45 = vadd.f32 %v774_v41, %v648_v35  ;;  %v665_v48 = vmul.f32 %v1134_v5, %v1134_v5 }
  0xd7   : > { %v513_v7 = vadd.f32 %v1105_v1, %v512_v2  ;;  %v1252_v2 = vld [vmem:[%s1604_s4 + $0x170] sm:$0xff]  }
  0xd8   : > { %v776_v50 = vadd.f32 %v775_v45, %v649_v40  ;;  %v1137_v9 = vunpack.c.l.bf16 %v1252_v2  ;;  %v1138_v14 = vunpack.c.h.bf16 %v1252_v2 }
  0xd9   : > { %v514_v11 = vadd.f32 %v1106_v6, %v513_v7  ;;  %v656_v7 = vmul.f32 %v1117_v28, %v1117_v28 }
  0xda   : > { %v777_v54 = vadd.f32 %v776_v50, %v650_v44  ;;  %v667_v57 = vmul.f32 %v1138_v14, %v1138_v14 }
  0xdb   : > { %v515_v16 = vadd.f32 %v1109_v10, %v514_v11  ;;  %v1253_v11 = vld [vmem:[%s1604_s4 + $0x178] sm:$0xff]  }
  0xdc   : > { %v778_v59 = vadd.f32 %v777_v54, %v651_v49  ;;  %v1141_v18 = vunpack.c.l.bf16 %v1253_v11  ;;  %v1142_v23 = vunpack.c.h.bf16 %v1253_v11 }
  0xdd   : > { %v516_v20 = vadd.f32 %v1110_v15, %v515_v16  ;;  %v658_v16 = vmul.f32 %v1121_v37, %v1121_v37 }
  0xde   : > { %v779_v63 = vadd.f32 %v778_v59, %v652_v53  ;;  %v669_v2 = vmul.f32 %v1142_v23, %v1142_v23 }
  0xdf   : > { %v517_v25 = vadd.f32 %v1113_v19, %v516_v20  ;;  %v1254_v20 = vld [vmem:[%s1604_s4 + $0x180] sm:$0xff]  }
  0xe0   : > { %v780_v4 = vadd.f32 %v779_v63, %v653_v58  ;;  %v1145_v27 = vunpack.c.l.bf16 %v1254_v20  ;;  %v1146_v32 = vunpack.c.h.bf16 %v1254_v20 }
  0xe1   : > { %v518_v29 = vadd.f32 %v1114_v24, %v517_v25  ;;  %v660_v25 = vmul.f32 %v1125_v46, %v1125_v46 }
  0xe2   : > { %v781_v8 = vadd.f32 %v780_v4, %v654_v62  ;;  %v671_v11 = vmul.f32 %v1146_v32, %v1146_v32 }
  0xe3   : > { %v519_v34 = vadd.f32 %v1117_v28, %v518_v29  ;;  %v1255_v29 = vld [vmem:[%s1604_s4 + $0x188] sm:$0xff]  }
  0xe4   : > { %v782_v13 = vadd.f32 %v781_v8, %v655_v3  ;;  %v1149_v36 = vunpack.c.l.bf16 %v1255_v29  ;;  %v1150_v41 = vunpack.c.h.bf16 %v1255_v29 }
  0xe5   : > { %v520_v38 = vadd.f32 %v1118_v33, %v519_v34  ;;  %v662_v34 = vmul.f32 %v1129_v55, %v1129_v55 }
  0xe6   : > { %v783_v17 = vadd.f32 %v782_v13, %v656_v7  ;;  %v673_v20 = vmul.f32 %v1150_v41, %v1150_v41 }
  0xe7   : > { %v521_v43 = vadd.f32 %v1121_v37, %v520_v38  ;;  %v1256_v38 = vld [vmem:[%s1604_s4 + $0x190] sm:$0xff]  }
  0xe8   : > { %v784_v22 = vadd.f32 %v783_v17, %v657_v12  ;;  %v1153_v45 = vunpack.c.l.bf16 %v1256_v38  ;;  %v1154_v50 = vunpack.c.h.bf16 %v1256_v38 }
  0xe9   : > { %v522_v47 = vadd.f32 %v1122_v42, %v521_v43  ;;  %v664_v43 = vmul.f32 %v1133_v0, %v1133_v0 }
  0xea   : > { %v785_v26 = vadd.f32 %v784_v22, %v658_v16  ;;  %v675_v29 = vmul.f32 %v1154_v50, %v1154_v50 }
  0xeb   : > { %v523_v52 = vadd.f32 %v1125_v46, %v522_v47  ;;  %v1257_v47 = vld [vmem:[%s1604_s4 + $0x198] sm:$0xff]  }
  0xec   : > { %v786_v31 = vadd.f32 %v785_v26, %v659_v21  ;;  %v1157_v54 = vunpack.c.l.bf16 %v1257_v47  ;;  %v1158_v59 = vunpack.c.h.bf16 %v1257_v47 }
  0xed   : > { %v524_v56 = vadd.f32 %v1126_v51, %v523_v52  ;;  %v666_v52 = vmul.f32 %v1137_v9, %v1137_v9 }
  0xee   : > { %v787_v35 = vadd.f32 %v786_v31, %v660_v25  ;;  %v677_v38 = vmul.f32 %v1158_v59, %v1158_v59 }
  0xef   : > { %v525_v61 = vadd.f32 %v1129_v55, %v524_v56  ;;  %v1258_v56 = vld [vmem:[%s1604_s4 + $0x1a0] sm:$0xff]  }
  0xf0   : > { %v788_v40 = vadd.f32 %v787_v35, %v661_v30  ;;  %v1161_v63 = vunpack.c.l.bf16 %v1258_v56  ;;  %v1162_v4 = vunpack.c.h.bf16 %v1258_v56 }
  0xf1   : > { %v526_v1 = vadd.f32 %v1130_v60, %v525_v61  ;;  %v668_v61 = vmul.f32 %v1141_v18, %v1141_v18 }
  0xf2   : > { %v789_v44 = vadd.f32 %v788_v40, %v662_v34  ;;  %v679_v47 = vmul.f32 %v1162_v4, %v1162_v4 }
  0xf3   : > { %v527_v6 = vadd.f32 %v1133_v0, %v526_v1  ;;  %v1259_v1 = vld [vmem:[%s1604_s4 + $0x1a8] sm:$0xff]  }
  0xf4   : > { %v790_v49 = vadd.f32 %v789_v44, %v663_v39  ;;  %v1165_v8 = vunpack.c.l.bf16 %v1259_v1  ;;  %v1166_v13 = vunpack.c.h.bf16 %v1259_v1 }
  0xf5   : > { %v528_v10 = vadd.f32 %v1134_v5, %v527_v6  ;;  %v670_v6 = vmul.f32 %v1145_v27, %v1145_v27 }
  0xf6   : > { %v791_v53 = vadd.f32 %v790_v49, %v664_v43  ;;  %v681_v56 = vmul.f32 %v1166_v13, %v1166_v13 }
  0xf7   : > { %v529_v15 = vadd.f32 %v1137_v9, %v528_v10  ;;  %v1260_v10 = vld [vmem:[%s1604_s4 + $0x1b0] sm:$0xff]  }
  0xf8   : > { %v792_v58 = vadd.f32 %v791_v53, %v665_v48  ;;  %v1169_v17 = vunpack.c.l.bf16 %v1260_v10  ;;  %v1170_v22 = vunpack.c.h.bf16 %v1260_v10 }
  0xf9   : > { %v530_v19 = vadd.f32 %v1138_v14, %v529_v15  ;;  %v672_v15 = vmul.f32 %v1149_v36, %v1149_v36 }
  0xfa   : > { %v793_v62 = vadd.f32 %v792_v58, %v666_v52  ;;  %v683_v1 = vmul.f32 %v1170_v22, %v1170_v22 }
  0xfb   : > { %v531_v24 = vadd.f32 %v1141_v18, %v530_v19  ;;  %v1261_v19 = vld [vmem:[%s1604_s4 + $0x1b8] sm:$0xff]  }
  0xfc   : > { %v794_v3 = vadd.f32 %v793_v62, %v667_v57  ;;  %v1173_v26 = vunpack.c.l.bf16 %v1261_v19  ;;  %v1174_v31 = vunpack.c.h.bf16 %v1261_v19 }
  0xfd   : > { %v532_v28 = vadd.f32 %v1142_v23, %v531_v24  ;;  %v674_v24 = vmul.f32 %v1153_v45, %v1153_v45 }
  0xfe   : > { %v795_v7 = vadd.f32 %v794_v3, %v668_v61  ;;  %v685_v10 = vmul.f32 %v1174_v31, %v1174_v31 }
  0xff   : > { %v533_v33 = vadd.f32 %v1145_v27, %v532_v28  ;;  %v1262_v28 = vld [vmem:[%s1604_s4 + $0x1c0] sm:$0xff]  }
 0x100   : > { %v796_v12 = vadd.f32 %v795_v7, %v669_v2  ;;  %v1177_v35 = vunpack.c.l.bf16 %v1262_v28  ;;  %v1178_v40 = vunpack.c.h.bf16 %v1262_v28 }
 0x101   : > { %v534_v37 = vadd.f32 %v1146_v32, %v533_v33  ;;  %v676_v33 = vmul.f32 %v1157_v54, %v1157_v54 }
 0x102   : > { %v797_v16 = vadd.f32 %v796_v12, %v670_v6  ;;  %v687_v19 = vmul.f32 %v1178_v40, %v1178_v40 }
 0x103   : > { %v535_v42 = vadd.f32 %v1149_v36, %v534_v37  ;;  %v1263_v37 = vld [vmem:[%s1604_s4 + $0x1c8] sm:$0xff]  }
 0x104   : > { %v798_v21 = vadd.f32 %v797_v16, %v671_v11  ;;  %v1181_v44 = vunpack.c.l.bf16 %v1263_v37  ;;  %v1182_v49 = vunpack.c.h.bf16 %v1263_v37 }
 0x105   : > { %v536_v46 = vadd.f32 %v1150_v41, %v535_v42  ;;  %v678_v42 = vmul.f32 %v1161_v63, %v1161_v63 }
 0x106   : > { %v799_v25 = vadd.f32 %v798_v21, %v672_v15  ;;  %v689_v28 = vmul.f32 %v1182_v49, %v1182_v49 }
 0x107   : > { %v537_v51 = vadd.f32 %v1153_v45, %v536_v46  ;;  %v1264_v46 = vld [vmem:[%s1604_s4 + $0x1d0] sm:$0xff]  }
 0x108   : > { %v800_v30 = vadd.f32 %v799_v25, %v673_v20  ;;  %v1185_v53 = vunpack.c.l.bf16 %v1264_v46  ;;  %v1186_v58 = vunpack.c.h.bf16 %v1264_v46 }
 0x109   : > { %v538_v55 = vadd.f32 %v1154_v50, %v537_v51  ;;  %v680_v51 = vmul.f32 %v1165_v8, %v1165_v8 }
 0x10a   : > { %v801_v34 = vadd.f32 %v800_v30, %v674_v24 }
 0x10b   : > { %v539_v60 = vadd.f32 %v1157_v54, %v538_v55  ;;  %v1265_v55 = vld [vmem:[%s1604_s4 + $0x1d8] sm:$0xff]  }
 0x10c   : > { %v802_v39 = vadd.f32 %v801_v34, %v675_v29  ;;  %v1189_v62 = vunpack.c.l.bf16 %v1265_v55  ;;  %v1190_v3 = vunpack.c.h.bf16 %v1265_v55 }
 0x10d   : > { %v540_v0 = vadd.f32 %v1158_v59, %v539_v60  ;;  %v682_v60 = vmul.f32 %v1169_v17, %v1169_v17 }
 0x10e   : > { %v803_v43 = vadd.f32 %v802_v39, %v676_v33 }
 0x10f   : > { %v541_v5 = vadd.f32 %v1161_v63, %v540_v0  ;;  %v1266_v0 = vld [vmem:[%s1604_s4 + $0x1e0] sm:$0xff]  }
 0x110   : > { %v804_v48 = vadd.f32 %v803_v43, %v677_v38  ;;  %v1193_v7 = vunpack.c.l.bf16 %v1266_v0  ;;  %v1194_v12 = vunpack.c.h.bf16 %v1266_v0  ;;  %v693_v43 = vmul.f32 %v1190_v3, %v1190_v3 }
 0x111   : > { %v542_v9 = vadd.f32 %v1162_v4, %v541_v5  ;;  %v684_v5 = vmul.f32 %v1173_v26, %v1173_v26 }
 0x112   : > { %v805_v52 = vadd.f32 %v804_v48, %v678_v42  ;;  %v694_v46 = vmul.f32 %v1193_v7, %v1193_v7 }
 0x113   : > { %v543_v14 = vadd.f32 %v1165_v8, %v542_v9  ;;  %v1267_v9 = vld [vmem:[%s1604_s4 + $0x1e8] sm:$0xff]  }
 0x114   : > { %v806_v57 = vadd.f32 %v805_v52, %v679_v47  ;;  %v1197_v16 = vunpack.c.l.bf16 %v1267_v9  ;;  %v1198_v21 = vunpack.c.h.bf16 %v1267_v9 }
 0x115   : > { %v544_v18 = vadd.f32 %v1166_v13, %v543_v14  ;;  %v686_v14 = vmul.f32 %v1177_v35, %v1177_v35 }
 0x116   : > { %v807_v61 = vadd.f32 %v806_v57, %v680_v51  ;;  %v696_v52 = vmul.f32 %v1197_v16, %v1197_v16  ;;  %v697_v55 = vmul.f32 %v1198_v21, %v1198_v21 }
 0x117   : > { %v545_v23 = vadd.f32 %v1169_v17, %v544_v18  ;;  %v1268_v18 = vld [vmem:[%s1604_s4 + $0x1f0] sm:$0xff]  }
 0x118   : > { %v808_v2 = vadd.f32 %v807_v61, %v681_v56  ;;  %v1201_v25 = vunpack.c.l.bf16 %v1268_v18  ;;  %v1202_v30 = vunpack.c.h.bf16 %v1268_v18 }
 0x119   : > { %v546_v27 = vadd.f32 %v1170_v22, %v545_v23  ;;  %v688_v23 = vmul.f32 %v1181_v44, %v1181_v44 }
 0x11a   : > { %v809_v6 = vadd.f32 %v808_v2, %v682_v60 }
 0x11b   : > { %v547_v32 = vadd.f32 %v1173_v26, %v546_v27  ;;  %v1269_v27 = vld [vmem:[%s1604_s4 + $0x1f8] sm:$0xff]  }
 0x11c   : > { %v810_v11 = vadd.f32 %v809_v6, %v683_v1  ;;  %v1205_v34 = vunpack.c.l.bf16 %v1269_v27  ;;  %v1206_v38 = vunpack.c.h.bf16 %v1269_v27 }
 0x11d   : > { %v548_v36 = vadd.f32 %v1174_v31, %v547_v32  ;;  %v690_v32 = vmul.f32 %v1185_v53, %v1185_v53 }
 0x11e   : > { %v811_v15 = vadd.f32 %v810_v11, %v684_v5  ;;  %v700_v1 = vmul.f32 %v1205_v34, %v1205_v34 }
 0x11f   : > { %v549_v41 = vadd.f32 %v1177_v35, %v548_v36  ;;  %v691_v36 = vmul.f32 %v1186_v58, %v1186_v58 }
 0x120   : > { %v812_v20 = vadd.f32 %v811_v15, %v685_v10 }
 0x121   : > { %v550_v45 = vadd.f32 %v1178_v40, %v549_v41  ;;  %v692_v40 = vmul.f32 %v1189_v62, %v1189_v62 }
 0x122   : > { %v813_v24 = vadd.f32 %v812_v20, %v686_v14 }
 0x123   : > { %v551_v50 = vadd.f32 %v1181_v44, %v550_v45 }
 0x124   : > { %v814_v29 = vadd.f32 %v813_v24, %v687_v19 }
 0x125   : > { %v552_v54 = vadd.f32 %v1182_v49, %v551_v50  ;;  %v695_v49 = vmul.f32 %v1194_v12, %v1194_v12 }
 0x126   : > { %v815_v33 = vadd.f32 %v814_v29, %v688_v23 }
 0x127   : > { %v553_v59 = vadd.f32 %v1185_v53, %v552_v54 }
 0x128   : > { %v816_v37 = vadd.f32 %v815_v33, %v689_v28 }
 0x129   : > { %v554_v63 = vadd.f32 %v1186_v58, %v553_v59  ;;  %v437_v58 = vld [vmem:[#allocation5] sm:$0x1]  ;;  %v698_v59 = vmul.f32 %v1201_v25, %v1201_v25 }
 0x12a   : > { %v817_v41 = vadd.f32 %v816_v37, %v690_v32 }
 0x12b   : > { %v555_v4 = vadd.f32 %v1189_v62, %v554_v63  ;;  %v699_v62 = vmul.f32 %v1202_v30, %v1202_v30 }
 0x12c   : > { %v818_v44 = vadd.f32 %v817_v41, %v691_v36 }
 0x12d   : > { %v556_v8 = vadd.f32 %v1190_v3, %v555_v4  ;;  %v701_v3 = vmul.f32 %v1206_v38, %v1206_v38 }
 0x12e   : > { %v819_v47 = vadd.f32 %v818_v44, %v692_v40 }
 0x12f   : > { %v557_v13 = vadd.f32 %v1193_v7, %v556_v8 }
 0x130   : > { %v820_v50 = vadd.f32 %v819_v47, %v693_v43 }
 0x131   : > { %v558_v17 = vadd.f32 %v1194_v12, %v557_v13 }
 0x132   : > { %v821_v53 = vadd.f32 %v820_v50, %v694_v46 }
 0x133   : > { %v559_v22 = vadd.f32 %v1197_v16, %v558_v17 }
 0x134   : > { %v822_v56 = vadd.f32 %v821_v53, %v695_v49 }
 0x135   : > { %v560_v26 = vadd.f32 %v1198_v21, %v559_v22 }
 0x136   : > { %v823_v60 = vadd.f32 %v822_v56, %v696_v52 }
 0x137   : > { %v561_v31 = vadd.f32 %v1201_v25, %v560_v26 }
 0x138   : > { %v824_v63 = vadd.f32 %v823_v60, %v697_v55 }
 0x139   : > { %v562_v35 = vadd.f32 %v1202_v30, %v561_v31 }
 0x13a   : > { %v825_v2 = vadd.f32 %v824_v63, %v698_v59 }
 0x13b   : > { %v563_v39 = vadd.f32 %v1205_v34, %v562_v35 }
 0x13c   : > { %v826_v4 = vadd.f32 %v825_v2, %v699_v62 }
 0x13d   : > { %v564_v42 = vadd.f32 %v1206_v38, %v563_v39 }
 0x13f   : > { %v565_v45 = vrot.slane %v564_v42, 4 }
 0x141   : > { %v566_v48 = vadd.f32 %v565_v45, %v564_v42 }
 0x143   : > { %v567_v51 = vrot.slane %v566_v48, 2 }
 0x145   : > { %v568_v54 = vadd.f32 %v567_v51, %v566_v48 }
 0x147   : > { %v569_v57 = vrot.slane %v568_v54, 1 }
 0x149   : > { %v570_v61 = vadd.f32 %v569_v57, %v568_v54 }
 0x14b   : > { %v571_v0 = vadd.f32 %v570_v61, %v437_v58 }
 0x14d   : > { %572 = vst [vmem:[#allocation5] sm:$0x1] %v571_v0 }
 0x14e   : > { %1385 = shalt.err (!%p1382_p0)
}
 0x14f   : > { %s1386_s5 = scalar_lea.hbm %s1744_s1, 16 }
 0x150   : > { %p1387_p1 = scmp.ne.s32.totalorder %s1744_s1, %s1386_s5  ;;  %p1392_p13 = scmp.lt.u32.totalorder %s1386_s5, %s1744_s1 }
 0x152   : > { %p1388_p2 = pnand %p1387_p1, %p1677_p7 }
 0x154   : > { %p1389_p11 = pneg %p1388_p2 }
 0x156   : > { %p1394_p3 = pnand %p1392_p13, %p1389_p11 }
 0x158   : > { %1397 = shalt.err (!%p1394_p3)
}
 0x159   : > { %1273 = dma.vmem_to_hbm [thread:$0]  (%p1677_p7), %s847_s20, 16, %s1744_s1, [#allocation4]   ;;  %v827_v5 = vadd.f32 %v826_v4, %v700_v1  ;;  %v573_v12 = vld [vmem:[#allocation6] sm:$0x1] }
 0x15a   : > { %s1489_s19 = smov [#allocation6]  }
 0x15b   : > { %v828_v6 = vadd.f32 %v827_v5, %v701_v3  ;;  %s859_s22 = sshll.u32 %s1489_s19, 4  ;;  %s860_s22 = int_to_ptr.vmem [resolvable:$true] %s859_s22 }
 0x15c   : > { %s1398_s23 = scalar_lea.vmem %s860_s22, 16  ;;  %s1404_s24 = scalar_lea.vmem %s860_s22, 32 }
 0x15d   : > { %v829_v7 = vrot.slane %v828_v6, 4  ;;  %p1399_p4 = scmp.ne.s32.totalorder %s860_s22, %s1398_s23  ;;  %p1405_p6 = scmp.lt.s32.totalorder %s860_s22, %s860_s22 }
 0x15e   : > { %p1406_p8 = scmp.lt.s32.totalorder %s1404_s24, %s1398_s23 }
 0x15f   : > { %v830_v8 = vadd.f32 %v829_v7, %v828_v6  ;;  %p1400_p9 = pnand %p1399_p4, %p1677_p7 }
 0x160   : > { %p1407_p10 = por %p1406_p8, %p1405_p6 }
 0x161   : > { %v831_v9 = vrot.slane %v830_v8, 2  ;;  %p1401_p5 = pneg %p1400_p9 }
 0x163   : > { %v832_v10 = vadd.f32 %v831_v9, %v830_v8  ;;  %p1408_p12 = pnand %p1407_p10, %p1401_p5 }
 0x165   : > { %v833_v11 = vrot.slane %v832_v10, 1 }
 0x167   : > { %v834_v13 = vadd.f32 %v833_v11, %v832_v10 }
 0x169   : > { %v835_v14 = vadd.f32 %v834_v13, %v573_v12 }
 0x16b   : > { %836 = vst [vmem:[#allocation6] sm:$0x1] %v835_v14 }
 0x16c   : > { %1411 = shalt.err (!%p1408_p12)
}
 0x16d   : > { %s1412_s28 = scalar_lea.hbm %s1745_s2, 16 }
 0x16e   : > { %p1413_p0 = scmp.ne.s32.totalorder %s1745_s2, %s1412_s28  ;;  %p1418_p11 = scmp.lt.u32.totalorder %s1412_s28, %s1745_s2 }
 0x170   : > { %p1414_p1 = pnand %p1413_p0, %p1677_p7 }
 0x172   : > { %p1415_p2 = pneg %p1414_p1 }
 0x174   : > { %p1420_p13 = pnand %p1418_p11, %p1415_p2 }
 0x176   : > { %1423 = shalt.err (!%p1420_p13)
}
 0x177   : > { %1275 = dma.vmem_to_hbm [thread:$0]  (%p1677_p7), %s860_s22, 16, %s1745_s2, [#allocation7]  }
 0x178   : > { %1453 = dma.done.wait (%p1677_p7), [#allocation4], 16  }
 0x179   : > { %1455 = vsyncadd (%p1677_p7), [#allocation4], 4294967280 }
 0x17a   : > { %1457 = dma.done.wait (%p1677_p7), [#allocation7], 16  }
 0x17b   : > { %1459 = vsyncadd (%p1677_p7), [#allocation7], 4294967280 }
 0x17c PF: > { %s18_s14 = sadd.s32 1, %s1482_s14   ;;  %s1750_s9 = smov %s1466_s10 }
 0x17d   : > { %p15_p3 = scmp.ge.s32.totalorder %s18_s14, 7   ;;  %s1751_s10 = smov %s1470_s11 }
 0x17e   : > { %s1752_s11 = smov %s1556_s21  ;;  %s1753_s12 = smov %s1478_s13 }
 0x17f   : > { %s1754_s13 = smov %s1756_s16  ;;  %17 = sbr.rel (!%p15_p3) target bundleno = 6 (0x6), region = 75 }
 0x186   :  { %876 = vsyncpa [#allocation3], 1 }
 0x187   :  { %878 = vsyncpa [#allocation3 + $0x1], 1 }
 0x188   :  { %879 = vsyncpa [#allocation4], 1 }
 0x189   :  { %881 = vsyncpa [#allocation4 + $0x1], 1 }
 0x18a   :  { %882 = vsyncpa [#allocation7], 1 }

</bundles_post_ra>
